<compile_context>
chip_gen: v5e
topology: v5e:2x2
jax: 0.10.0
libtpu: 0.0.40
codegen_flags: <defaults>
</compile_context>

<pallas_src>
import math

import numpy as np
import jax
import jax.numpy as jnp
from jax.experimental import pallas as pl
from jax.experimental.pallas import tpu as pltpu

_MIB = 1024 * 1024
_ROW_ALIGN = 16          # bf16 sublane packing
_LANE = 128


def _round_up(x: int, m: int) -> int:
    return ((x + m - 1) // m) * m


def _cdiv(a: int, b: int) -> int:
    return -(-a // b)


# -----------------------------------------------------------------------------
# Kernels
# -----------------------------------------------------------------------------
def _ff1_kernel(x_ref, w1_ref, b1_ref, out_ref):
    """relu(x @ W1 + b1).  Used for both the resident and the N-tiled layout."""
    h = jnp.dot(x_ref[...], w1_ref[...], preferred_element_type=jnp.float32)
    out_ref[...] = jnp.maximum(h + b1_ref[...], 0.0).astype(out_ref.dtype)


def _ff2_resident_kernel(x_ref, w1_ref, b1_ref, w2_ref, b2_ref, out_ref):
    """relu(x @ W1 + b1) @ W2 + b2 with both (padded) weights resident in VMEM."""
    h = jnp.dot(x_ref[...], w1_ref[...], preferred_element_type=jnp.float32)
    h = jnp.maximum(h + b1_ref[...], 0.0).astype(w2_ref.dtype)   # bf16 MXU operand
    out = jnp.dot(h, w2_ref[...], preferred_element_type=jnp.float32) + b2_ref[...]
    out_ref[...] = out.astype(out_ref.dtype)


def _ff2_tiled_kernel(x_ref, w1_ref, b1_ref, w2_ref, b2_ref, out_ref, h_ref):
    """Large-H fallback: W2 streamed in (Hp, TN) column tiles.

    Layer-1 activations for the current row tile are computed once (j == 0)
    into a VMEM scratch and reused for every column tile of layer 2.
    """
    j = pl.program_id(1)

    @pl.when(j == 0)
    def _():
        h = jnp.dot(x_ref[...], w1_ref[...], preferred_element_type=jnp.float32)
        h_ref[...] = jnp.maximum(h + b1_ref[...], 0.0).astype(h_ref.dtype)

    out = jnp.dot(h_ref[...], w2_ref[...], preferred_element_type=jnp.float32)
    out_ref[...] = (out + b2_ref[...]).astype(out_ref.dtype)


# -----------------------------------------------------------------------------
# One-time parameter packing (hoisted off the per-call critical path)
# -----------------------------------------------------------------------------
def prepare_params(params, *, num_layers=2, force_tiled=False,
                   weight_vmem_budget_bytes=24 * _MIB):
    """Pack nn.Linear params for the kernels: transpose to (in, out), zero-pad
    the out axis to a lane-dense multiple (exact: relu(0)=0, zero W2 rows/cols
    contribute nothing), cast weights to bf16, and pick resident vs. streamed
    weights from a VMEM budget (v7x only has 64 MiB of VMEM)."""
    w1 = jnp.asarray(params["w1"], jnp.float32)    # (H, D) torch Linear layout
    b1 = jnp.asarray(params["b1"], jnp.float32)    # (H,)
    H, D = int(w1.shape[0]), int(w1.shape[1])

    w_bytes = D * H * 2 + (H * H * 2 if num_layers == 2 else 0)
    tiled = bool(force_tiled) or w_bytes > weight_vmem_budget_bytes
    TN = 256 if tiled else _LANE
    Hp = _round_up(max(H, TN), TN)

    def pad_cols(w_t, rows):
        return jnp.zeros((rows, Hp), jnp.float32).at[
            :w_t.shape[0], :w_t.shape[1]].set(w_t)

    packed = {
        "w1": pad_cols(w1.T, D).astype(jnp.bfloat16),                  # (D, Hp)
        "b1": jnp.zeros((1, Hp), jnp.float32).at[:, :H].set(b1[None, :]),
        "meta": dict(D=D, H=H, Hp=Hp, TN=TN, num_layers=int(num_layers),
                     tiled=tiled),
    }
    if num_layers == 2:
        w2 = jnp.asarray(params["w2"], jnp.float32)                    # (H, H)
        b2 = jnp.asarray(params["b2"], jnp.float32)
        packed["w2"] = pad_cols(w2.T, Hp).astype(jnp.bfloat16)         # (Hp, Hp)
        packed["b2"] = jnp.zeros((1, Hp), jnp.float32).at[:, :H].set(b2[None, :])
    return packed


# -----------------------------------------------------------------------------
# Helpers
# -----------------------------------------------------------------------------
def _resident_spec(shape, index_map, single_buffer):
    if single_buffer:
        # Constant-index weight blocks: single buffer halves their VMEM footprint.
        return pl.BlockSpec(shape, index_map, pipeline_mode=pl.Buffered(1))
    return pl.BlockSpec(shape, index_map)


def _with_resident_fallback(call_fn):
    try:
        return call_fn(True)
    except Exception:          # pragma: no cover - compat fallback if Buffered(1) rejected
        return call_fn(False)


def _vmem_limit(*byte_terms):
    need = int(sum(byte_terms))
    return int(min(max(need + need // 4 + 4 * _MIB, 32 * _MIB), 56 * _MIB))


# -----------------------------------------------------------------------------
# Forward wrapper
# -----------------------------------------------------------------------------
def san_feed_forward(x, packed, *, drop_prob=0.0, block_rows=512):
    """Fused feed-forward.  x: (..., input_size) -> (..., hidden_size)."""
    del drop_prob              # stored by the PyTorch module, never used in forward()
    meta = packed["meta"]
    D, H, Hp, TN = meta["D"], meta["H"], meta["Hp"], meta["TN"]
    num_layers, tiled = meta["num_layers"], meta["tiled"]

    orig_shape = x.shape
    assert orig_shape[-1] == D, (orig_shape, D)
    M = int(np.prod(orig_shape[:-1])) if len(orig_shape) > 1 else 1
    x2 = x.reshape(M, D).astype(jnp.bfloat16)      # bf16 MXU operand, half HBM bytes

    # Row tiling: big tiles amortize per-step overhead and feed the 256-wide
    # MXU; but ensure >= 2 grid steps so the "parallel" axis can split across
    # the two v7x TensorCores.  Ragged last block handled by Pallas (no jnp.pad).
    TM = min(block_rows, _round_up(M, _ROW_ALIGN))
    if M > _ROW_ALIGN and _cdiv(M, TM) < 2:
        TM = _round_up(_cdiv(M, 2), _ROW_ALIGN)
    n_row = _cdiv(M, TM)

    w1_p, b1_p = packed["w1"], packed["b1"]
    out_shape = jax.ShapeDtypeStruct((M, Hp), jnp.float32)   # lane-dense (Hp % 128 == 0)

    if num_layers == 2:
        w2_p, b2_p = packed["w2"], packed["b2"]
        if not tiled:
            vmem = _vmem_limit(w1_p.size * 2, w2_p.size * 2, 4 * Hp * 4,
                               2 * TM * D * 2, 2 * TM * Hp * 4, TM * Hp * 4)

            def call(single_buffer):
                rspec = lambda a: _resident_spec(a.shape, lambda i: (0, 0), single_buffer)
                return pl.pallas_call(
                    _ff2_resident_kernel,
                    out_shape=out_shape,
                    grid_spec=pltpu.PrefetchScalarGridSpec(
                        num_scalar_prefetch=0, grid=(n_row,),
                        in_specs=[pl.BlockSpec((TM, D), lambda i: (i, 0)),
                                  rspec(w1_p), rspec(b1_p),
                                  rspec(w2_p), rspec(b2_p)],
                        out_specs=pl.BlockSpec((TM, Hp), lambda i: (i, 0))),
                    compiler_params=pltpu.CompilerParams(
                        dimension_semantics=("parallel",),
                        vmem_limit_bytes=vmem),
                )(x2, w1_p, b1_p, w2_p, b2_p)

            out_p = _with_resident_fallback(call)
        else:
            n_col = Hp // TN
            vmem = _vmem_limit(w1_p.size * 2, 2 * Hp * TN * 2, 4 * Hp * 4,
                               2 * TM * D * 2, 2 * TM * TN * 4,
                               TM * Hp * 2 + TM * Hp * 4)

            def call(single_buffer):
                rspec = lambda a: _resident_spec(a.shape, lambda i, j: (0, 0), single_buffer)
                return pl.pallas_call(
                    _ff2_tiled_kernel,
                    out_shape=out_shape,
                    grid_spec=pltpu.PrefetchScalarGridSpec(
                        num_scalar_prefetch=0, grid=(n_row, n_col),
                        in_specs=[pl.BlockSpec((TM, D), lambda i, j: (i, 0)),
                                  rspec(w1_p), rspec(b1_p),
                                  pl.BlockSpec((Hp, TN), lambda i, j: (0, j)),
                                  pl.BlockSpec((1, TN), lambda i, j: (0, j))],
                        out_specs=pl.BlockSpec((TM, TN), lambda i, j: (i, j)),
                        scratch_shapes=[pltpu.VMEM((TM, Hp), jnp.bfloat16)]),
                    compiler_params=pltpu.CompilerParams(
                        dimension_semantics=("parallel", "arbitrary"),
                        vmem_limit_bytes=vmem),
                )(x2, w1_p, b1_p, w2_p, b2_p)

            out_p = _with_resident_fallback(call)
            # TODO(synk): for extremely large D*Hp also tile W1 / the layer-2 K axis
            # with an f32 VMEM accumulator instead of keeping W1 fully resident.
    else:
        if not tiled:
            vmem = _vmem_limit(w1_p.size * 2, 2 * Hp * 4,
                               2 * TM * D * 2, 2 * TM * Hp * 4)

            def call(single_buffer):
                rspec = lambda a: _resident_spec(a.shape, lambda i: (0, 0), single_buffer)
                return pl.pallas_call(
                    _ff1_kernel,
                    out_shape=out_shape,
                    grid_spec=pltpu.PrefetchScalarGridSpec(
                        num_scalar_prefetch=0, grid=(n_row,),
                        in_specs=[pl.BlockSpec((TM, D), lambda i: (i, 0)),
                                  rspec(w1_p), rspec(b1_p)],
                        out_specs=pl.BlockSpec((TM, Hp), lambda i: (i, 0))),
                    compiler_params=pltpu.CompilerParams(
                        dimension_semantics=("parallel",),
                        vmem_limit_bytes=vmem),
                )(x2, w1_p, b1_p)

            out_p = _with_resident_fallback(call)
        else:
            n_col = Hp // TN
            vmem = _vmem_limit(2 * D * TN * 2, 2 * TN * 4,
                               2 * TM * D * 2, 2 * TM * TN * 4)
            out_p = pl.pallas_call(
                _ff1_kernel,
                out_shape=out_shape,
                grid_spec=pltpu.PrefetchScalarGridSpec(
                    num_scalar_prefetch=0, grid=(n_row, n_col),
                    in_specs=[pl.BlockSpec((TM, D), lambda i, j: (i, 0)),
                              pl.BlockSpec((D, TN), lambda i, j: (0, j)),
                              pl.BlockSpec((1, TN), lambda i, j: (0, j))],
                    out_specs=pl.BlockSpec((TM, TN), lambda i, j: (i, j))),
                compiler_params=pltpu.CompilerParams(
                    dimension_semantics=("parallel", "parallel"),
                    vmem_limit_bytes=vmem),
            )(x2, w1_p, b1_p)

    out = out_p[:, :H]
    return out.reshape(orig_shape[:-1] + (H,))


# -----------------------------------------------------------------------------
# Parameter init (nn.Linear defaults) and pure-JAX reference
# -----------------------------------------------------------------------------
def init_params(key, input_size, hidden_size, num_layers):
    k1, k2, k3, k4 = jax.random.split(key, 4)
    bound1 = 1.0 / math.sqrt(input_size)
    params = {
        "w1": jax.random.uniform(k1, (hidden_size, input_size), jnp.float32,
                                 -bound1, bound1),
        "b1": jax.random.uniform(k2, (hidden_size,), jnp.float32, -bound1, bound1),
    }
    if num_layers == 2:
        bound2 = 1.0 / math.sqrt(hidden_size)
        params["w2"] = jax.random.uniform(k3, (hidden_size, hidden_size),
                                          jnp.float32, -bound2, bound2)
        params["b2"] = jax.random.uniform(k4, (hidden_size,), jnp.float32,
                                          -bound2, bound2)
    return params


def san_feed_forward_ref(x, params, *, num_layers=2):
    y = jnp.maximum(x @ params["w1"].T + params["b1"], 0.0)
    if num_layers == 2:
        y = y @ params["w2"].T + params["b2"]
    return y


# -----------------------------------------------------------------------------
if __name__ == "__main__":
    TOL = dict(atol=5e-2, rtol=5e-2)   # bf16 MXU operands (f32 accumulation)

    B, SEQ, INPUT, HIDDEN = 2, 8, 16, 32
    key = jax.random.PRNGKey(0)
    kx, kx2, kp1, kp2 = jax.random.split(key, 4)
    x = jax.random.normal(kx, (B, SEQ, INPUT), jnp.float32)

    # ---- num_layers == 2, resident-weight path -------------------------------
    params2 = init_params(kp1, INPUT, HIDDEN, num_layers=2)
    packed2 = prepare_params(params2, num_layers=2)
    out2 = jax.block_until_ready(san_feed_forward(x, packed2, drop_prob=0.1))
    ref2 = san_feed_forward_ref(x, params2, num_layers=2)
    assert out2.shape == (B, SEQ, HIDDEN), out2.shape
    np.testing.assert_allclose(np.asarray(out2), np.asarray(ref2), **TOL)

    # ---- num_layers == 2, column-tiled (large-H fallback) path ----------------
    packed2t = prepare_params(params2, num_layers=2, force_tiled=True)
    out2t = jax.block_until_ready(san_feed_forward(x, packed2t, drop_prob=0.1))
    np.testing.assert_allclose(np.asarray(out2t), np.asarray(ref2), **TOL)

    # ---- num_layers == 1, resident and tiled ----------------------------------
    params1 = init_params(kp2, INPUT, HIDDEN, num_layers=1)
    packed1 = prepare_params(params1, num_layers=1)
    out1 = jax.block_until_ready(san_feed_forward(x, packed1, drop_prob=0.1))
    ref1 = san_feed_forward_ref(x, params1, num_layers=1)
    assert out1.shape == (B, SEQ, HIDDEN), out1.shape
    np.testing.assert_allclose(np.asarray(out1), np.asarray(ref1), **TOL)

    packed1t = prepare_params(params1, num_layers=1, force_tiled=True)
    out1t = jax.block_until_ready(san_feed_forward(x, packed1t, drop_prob=0.1))
    np.testing.assert_allclose(np.asarray(out1t), np.asarray(ref1), **TOL)

    # ---- larger, non-divisible row count: multi-step grid + ragged last block --
    xb = jax.random.normal(kx2, (3, 50, INPUT), jnp.float32)       # M = 150 rows
    outb = jax.block_until_ready(san_feed_forward(xb, packed2, drop_prob=0.1))
    refb = san_feed_forward_ref(xb, params2, num_layers=2)
    assert outb.shape == (3, 50, HIDDEN), outb.shape
    np.testing.assert_allclose(np.asarray(outb), np.asarray(refb), **TOL)

    print("KERNEL_OK")
</pallas_src>

<mosaic_0001>
module attributes {stable_mosaic.version = 11 : i64} {
  func.func @_ff2_resident_kernel(%arg0: i32, %arg1: memref<16x16xbf16, #tpu.memory_space<vmem>>, %arg2: memref<16x128xbf16, #tpu.memory_space<vmem>>, %arg3: memref<1x128xf32, #tpu.memory_space<vmem>>, %arg4: memref<128x128xbf16, #tpu.memory_space<vmem>>, %arg5: memref<1x128xf32, #tpu.memory_space<vmem>>, %arg6: memref<16x128xf32, #tpu.memory_space<vmem>>) attributes {dimension_semantics = [#tpu.dimension_semantics<parallel>], iteration_bounds = array<i64: 1>, scalar_prefetch = 0 : i64, scratch_operands = 0 : i64, tpu.core_type = #tpu.core_type<tc>, window_params = [{transform_indices = @transform_0, window_bounds = array<i64: 16, 16>}, {pipeline_mode = #tpu.pipeline_mode<synchronous>, transform_indices = @transform_1, window_bounds = array<i64: 16, 128>}, {pipeline_mode = #tpu.pipeline_mode<synchronous>, transform_indices = @transform_2, window_bounds = array<i64: 1, 128>}, {pipeline_mode = #tpu.pipeline_mode<synchronous>, transform_indices = @transform_3, window_bounds = array<i64: 128, 128>}, {pipeline_mode = #tpu.pipeline_mode<synchronous>, transform_indices = @transform_4, window_bounds = array<i64: 1, 128>}, {transform_indices = @transform_5, window_bounds = array<i64: 16, 128>}]} {
    %c0 = arith.constant 0 : index
    %c0_0 = arith.constant 0 : index
    %0 = vector.load %arg1[%c0, %c0_0] : memref<16x16xbf16, #tpu.memory_space<vmem>>, vector<16x16xbf16>
    %c0_1 = arith.constant 0 : index
    %c0_2 = arith.constant 0 : index
    %1 = vector.load %arg2[%c0_1, %c0_2] : memref<16x128xbf16, #tpu.memory_space<vmem>>, vector<16x128xbf16>
    %cst = arith.constant dense<0.000000e+00> : vector<16x128xf32>
    %2 = tpu.matmul %0, %1, %cst {dimension_numbers = #tpu.dot_dimension_numbers<[1], [0], [0], [1], [0, 0, 1, 1], [], []>} : vector<16x16xbf16>, vector<16x128xbf16>, vector<16x128xf32> -> vector<16x128xf32>
    %c0_3 = arith.constant 0 : index
    %c0_4 = arith.constant 0 : index
    %3 = vector.load %arg3[%c0_3, %c0_4] : memref<1x128xf32, #tpu.memory_space<vmem>>, vector<1x128xf32>
    %4 = vector.broadcast %3 : vector<1x128xf32> to vector<16x128xf32>
    %5 = arith.addf %2, %4 : vector<16x128xf32>
    %cst_5 = arith.constant 0.000000e+00 : f32
    %6 = vector.broadcast %cst_5 : f32 to vector<16x128xf32>
    %7 = arith.maximumf %5, %6 : vector<16x128xf32>
    %8 = arith.truncf %7 : vector<16x128xf32> to vector<16x128xbf16>
    %c0_6 = arith.constant 0 : index
    %c0_7 = arith.constant 0 : index
    %9 = vector.load %arg4[%c0_6, %c0_7] : memref<128x128xbf16, #tpu.memory_space<vmem>>, vector<128x128xbf16>
    %cst_8 = arith.constant dense<0.000000e+00> : vector<16x128xf32>
    %10 = tpu.matmul %8, %9, %cst_8 {dimension_numbers = #tpu.dot_dimension_numbers<[1], [0], [0], [1], [0, 0, 1, 1], [], []>} : vector<16x128xbf16>, vector<128x128xbf16>, vector<16x128xf32> -> vector<16x128xf32>
    %c0_9 = arith.constant 0 : index
    %c0_10 = arith.constant 0 : index
    %11 = vector.load %arg5[%c0_9, %c0_10] : memref<1x128xf32, #tpu.memory_space<vmem>>, vector<1x128xf32>
    %12 = vector.broadcast %11 : vector<1x128xf32> to vector<16x128xf32>
    %13 = arith.addf %10, %12 : vector<16x128xf32>
    %c0_11 = arith.constant 0 : index
    %c0_12 = arith.constant 0 : index
    %14 = vector.load %arg6[%c0_11, %c0_12] : memref<16x128xf32, #tpu.memory_space<vmem>>, vector<16x128xf32>
    tpu.vector_store %arg6[%c0_11, %c0_12], %13 {strides = array<i32>} : memref<16x128xf32, #tpu.memory_space<vmem>>, vector<16x128xf32>,
    return
  }
  func.func @transform_0(%arg0: i32) -> (i32, i32) {
    %c0_i32 = arith.constant 0 : i32
    %c0_i32_0 = arith.constant 0 : i32
    return %arg0, %c0_i32 : i32, i32
  }
  func.func @transform_1(%arg0: i32) -> (i32, i32) {
    %c0_i32 = arith.constant 0 : i32
    %c0_i32_0 = arith.constant 0 : i32
    %c0_i32_1 = arith.constant 0 : i32
    return %c0_i32, %c0_i32_0 : i32, i32
  }
  func.func @transform_2(%arg0: i32) -> (i32, i32) {
    %c0_i32 = arith.constant 0 : i32
    %c0_i32_0 = arith.constant 0 : i32
    %c0_i32_1 = arith.constant 0 : i32
    return %c0_i32, %c0_i32_0 : i32, i32
  }
  func.func @transform_3(%arg0: i32) -> (i32, i32) {
    %c0_i32 = arith.constant 0 : i32
    %c0_i32_0 = arith.constant 0 : i32
    %c0_i32_1 = arith.constant 0 : i32
    return %c0_i32, %c0_i32_0 : i32, i32
  }
  func.func @transform_4(%arg0: i32) -> (i32, i32) {
    %c0_i32 = arith.constant 0 : i32
    %c0_i32_0 = arith.constant 0 : i32
    %c0_i32_1 = arith.constant 0 : i32
    return %c0_i32, %c0_i32_0 : i32, i32
  }
  func.func @transform_5(%arg0: i32) -> (i32, i32) {
    %c0_i32 = arith.constant 0 : i32
    %c0_i32_0 = arith.constant 0 : i32
    return %arg0, %c0_i32 : i32, i32
  }
}

module attributes {stable_mosaic.version = 11 : i64} {
  func.func @_ff2_resident_kernel(%arg0: i32, %arg1: memref<16x16xbf16, #tpu.memory_space<vmem>>, %arg2: memref<16x128xbf16, #tpu.memory_space<vmem>>, %arg3: memref<1x128xf32, #tpu.memory_space<vmem>>, %arg4: memref<128x128xbf16, #tpu.memory_space<vmem>>, %arg5: memref<1x128xf32, #tpu.memory_space<vmem>>, %arg6: memref<16x128xf32, #tpu.memory_space<vmem>>) attributes {dimension_semantics = [#tpu.dimension_semantics<parallel>], iteration_bounds = array<i64: 1>, scalar_prefetch = 0 : i64, scratch_operands = 0 : i64, tpu.core_type = #tpu.core_type<tc>, window_params = [{transform_indices = @transform_0, window_bounds = array<i64: 16, 16>}, {pipeline_mode = #tpu.pipeline_mode<synchronous>, transform_indices = @transform_1, window_bounds = array<i64: 16, 128>}, {pipeline_mode = #tpu.pipeline_mode<synchronous>, transform_indices = @transform_2, window_bounds = array<i64: 1, 128>}, {pipeline_mode = #tpu.pipeline_mode<synchronous>, transform_indices = @transform_3, window_bounds = array<i64: 128, 128>}, {pipeline_mode = #tpu.pipeline_mode<synchronous>, transform_indices = @transform_4, window_bounds = array<i64: 1, 128>}, {transform_indices = @transform_5, window_bounds = array<i64: 16, 128>}]} {
    %c0 = arith.constant 0 : index
    %c0_0 = arith.constant 0 : index
    %0 = vector.load %arg1[%c0, %c0_0] : memref<16x16xbf16, #tpu.memory_space<vmem>>, vector<16x16xbf16>
    %c0_1 = arith.constant 0 : index
    %c0_2 = arith.constant 0 : index
    %1 = vector.load %arg2[%c0_1, %c0_2] : memref<16x128xbf16, #tpu.memory_space<vmem>>, vector<16x128xbf16>
    %cst = arith.constant dense<0.000000e+00> : vector<16x128xf32>
    %2 = tpu.matmul %0, %1, %cst {dimension_numbers = #tpu.dot_dimension_numbers<[1], [0], [0], [1], [0, 0, 1, 1], [], []>} : vector<16x16xbf16>, vector<16x128xbf16>, vector<16x128xf32> -> vector<16x128xf32>
    %c0_3 = arith.constant 0 : index
    %c0_4 = arith.constant 0 : index
    %3 = vector.load %arg3[%c0_3, %c0_4] : memref<1x128xf32, #tpu.memory_space<vmem>>, vector<1x128xf32>
    %4 = vector.broadcast %3 : vector<1x128xf32> to vector<16x128xf32>
    %5 = arith.addf %2, %4 : vector<16x128xf32>
    %cst_5 = arith.constant 0.000000e+00 : f32
    %6 = vector.broadcast %cst_5 : f32 to vector<16x128xf32>
    %7 = arith.maximumf %5, %6 : vector<16x128xf32>
    %8 = arith.truncf %7 : vector<16x128xf32> to vector<16x128xbf16>
    %c0_6 = arith.constant 0 : index
    %c0_7 = arith.constant 0 : index
    %9 = vector.load %arg4[%c0_6, %c0_7] : memref<128x128xbf16, #tpu.memory_space<vmem>>, vector<128x128xbf16>
    %cst_8 = arith.constant dense<0.000000e+00> : vector<16x128xf32>
    %10 = tpu.matmul %8, %9, %cst_8 {dimension_numbers = #tpu.dot_dimension_numbers<[1], [0], [0], [1], [0, 0, 1, 1], [], []>} : vector<16x128xbf16>, vector<128x128xbf16>, vector<16x128xf32> -> vector<16x128xf32>
    %c0_9 = arith.constant 0 : index
    %c0_10 = arith.constant 0 : index
    %11 = vector.load %arg5[%c0_9, %c0_10] : memref<1x128xf32, #tpu.memory_space<vmem>>, vector<1x128xf32>
    %12 = vector.broadcast %11 : vector<1x128xf32> to vector<16x128xf32>
    %13 = arith.addf %10, %12 : vector<16x128xf32>
    %c0_11 = arith.constant 0 : index
    %c0_12 = arith.constant 0 : index
    %14 = vector.load %arg6[%c0_11, %c0_12] : memref<16x128xf32, #tpu.memory_space<vmem>>, vector<16x128xf32>
    tpu.vector_store %arg6[%c0_11, %c0_12], %13 {strides = array<i32>} : memref<16x128xf32, #tpu.memory_space<vmem>>, vector<16x128xf32>,
    return
  }
  func.func @transform_0(%arg0: i32) -> (i32, i32) {
    %c0_i32 = arith.constant 0 : i32
    %c0_i32_0 = arith.constant 0 : i32
    return %arg0, %c0_i32 : i32, i32
  }
  func.func @transform_1(%arg0: i32) -> (i32, i32) {
    %c0_i32 = arith.constant 0 : i32
    %c0_i32_0 = arith.constant 0 : i32
    %c0_i32_1 = arith.constant 0 : i32
    return %c0_i32, %c0_i32_0 : i32, i32
  }
  func.func @transform_2(%arg0: i32) -> (i32, i32) {
    %c0_i32 = arith.constant 0 : i32
    %c0_i32_0 = arith.constant 0 : i32
    %c0_i32_1 = arith.constant 0 : i32
    return %c0_i32, %c0_i32_0 : i32, i32
  }
  func.func @transform_3(%arg0: i32) -> (i32, i32) {
    %c0_i32 = arith.constant 0 : i32
    %c0_i32_0 = arith.constant 0 : i32
    %c0_i32_1 = arith.constant 0 : i32
    return %c0_i32, %c0_i32_0 : i32, i32
  }
  func.func @transform_4(%arg0: i32) -> (i32, i32) {
    %c0_i32 = arith.constant 0 : i32
    %c0_i32_0 = arith.constant 0 : i32
    %c0_i32_1 = arith.constant 0 : i32
    return %c0_i32, %c0_i32_0 : i32, i32
  }
  func.func @transform_5(%arg0: i32) -> (i32, i32) {
    %c0_i32 = arith.constant 0 : i32
    %c0_i32_0 = arith.constant 0 : i32
    return %arg0, %c0_i32 : i32, i32
  }
}

</mosaic_0001>

<bundles_post_ra>
// kernel: tpu_custom_call.1
= control target key start
LH: loop header
LB: loop body
LE: loop exit
PB: predicated region body
PF: predicated region fallthrough
CT: control target
= control target key end

     0   :  { %10 = vsyncpa [#allocation3], 0  ;;  %s432_s0 = inlined_call_operand.hbm [shape: bf16[16,16], index: 0, kind: input, shape index: {}]   ;;  %s433_s1 = inlined_call_operand.hbm [shape: bf16[16,128], index: 1, kind: input, shape index: {}]   ;;  %s434_s2 = inlined_call_operand.vmem [shape: f32[1,128], index: 2, kind: input, shape index: {}]   ;;  %s435_s3 = inlined_call_operand.hbm [shape: bf16[128,128], index: 3, kind: input, shape index: {}]   ;;  %s436_s4 = inlined_call_operand.vmem [shape: f32[1,128], index: 4, kind: input, shape index: {}]   ;;  %s437_s5 = inlined_call_operand.hbm [shape: f32[16,128], index: 5, kind: output, shape index: {}]  }
   0x1   :  { %11 = vsyncpa [#allocation6], 0 }
   0x2   :  { %12 = vsyncpa [#allocation4], 0  ;;  %s30_s20 = sshll.u32 %s433_s1, 4  ;;  %s376_s21 = smov [#allocation5]   ;;  %s31_s20 = int_to_ptr.hbm [resolvable:$true] %s30_s20 }
   0x3   :  { %s32_s22 = sshll.u32 %s376_s21, 4  ;;  %s17_s25 = sshll.u32 %s432_s0, 4  ;;  %s33_s22 = int_to_ptr.vmem [resolvable:$true] %s32_s22  ;;  %s18_s25 = int_to_ptr.hbm [resolvable:$true] %s17_s25 }
   0x4   :  { %s377_s26 = smov 64   ;;  %s378_s27 = smov 4  }
   0x5   :  { %38 = dma.hbm_to_vmem [thread:$0]  %s31_s20, 128, %s33_s22, [#allocation6], %s377_s26, %s377_s26, %s378_s27  }
   0x6   :  { %s379_s28 = smov [#allocation2]   ;;  %s45_s7 = sshll.u32 %s435_s3, 4  ;;  %s46_s7 = int_to_ptr.hbm [resolvable:$true] %s45_s7 }
   0x7   :  { %s19_s29 = sshll.u32 %s379_s28, 4  ;;  %s380_s1 = smov [#allocation7]   ;;  %s20_s29 = int_to_ptr.vmem [resolvable:$true] %s19_s29 }
   0x8   :  { %25 = dma.hbm_to_vmem [thread:$0]  %s18_s25, 128, %s20_s29, [#allocation3], %s377_s26, %s377_s26, %s378_s27  }
   0x9   :  { %s47_s8 = sshll.u32 %s380_s1, 4  ;;  %s48_s8 = int_to_ptr.vmem [resolvable:$true] %s47_s8 }
   0xa   :  { %53 = dma.hbm_to_vmem [thread:$0]  %s46_s7, 1024, %s48_s8, [#allocation6], %s377_s26, %s377_s26, %s378_s27  }
   0xb   :  { %370 = dma.done.wait [#allocation3], 128  }
   0xc   :  { %371 = vsyncadd [#allocation3], 4294967168 }
   0xd   :  { %372 = dma.done.wait [#allocation6], 1152  }
   0xe   :  { %373 = vsyncadd [#allocation6], 4294966144  ;;  %v255_v0 = vld [vmem:[#allocation5] sm:$0xff]  ;;  %v254_v2 = vld [vmem:[#allocation2] sm:$0xff]  ;;  %vm88_vm0 = vcmask 130048   ;;  %s381_s11 = smov [#allocation8]  }
   0xf   :  { %v263_v1 = vld [vmem:[#allocation7 + $0x38] sm:$0xff]  ;;  %99 = vmatpush.bf16.msra.mxu0 %v255_v0  ;;  %v262_v3 = vld [vmem:[#allocation7 + $0x30] sm:$0xff]  ;;  %v261_v4 = vld [vmem:[#allocation7 + $0x28] sm:$0xff]  ;;  %s197_s12 = sshll.u32 %s381_s11, 4  ;;  %s382_s15 = smov 128   ;;  %s198_s12 = int_to_ptr.vmem [resolvable:$true] %s197_s12 }
  0x10   :  { %177 = vmatpush.bf16.msra.mxu1 %v263_v1  ;;  %v260_v5 = vld [vmem:[#allocation7 + $0x20] sm:$0xff]  ;;  %v259_v6 = vld [vmem:[#allocation7 + $0x18] sm:$0xff]  ;;  %v258_v7 = vld [vmem:[#allocation7 + $0x10] sm:$0xff]  ;;  %s383_s16 = smov 8  }
  0x11   :  { %v257_v8 = vld [vmem:[#allocation7 + $0x8] sm:$0xff]  ;;  %v256_v9 = vld [vmem:[#allocation7] sm:$0xff]  ;;  %v272_v11 = vld [vmem:[%s434_s2] ss:$0 sm:$0xff]  ;;  %s199_s2 = sshll.u32 %s437_s5, 4  ;;  %s200_s2 = int_to_ptr.hbm [resolvable:$true] %s199_s2 }
  0x12   :  { %221 = vmatmul.msk.bf16.vlgmr.msra.gmra.mxu0 %vm88_vm0, %v254_v2  ;;  %v273_v18 = vld [vmem:[%s436_s4] ss:$0 sm:$0xff] }
  0x14   :  { %178 = vmatpush.bf16.msra.mxu1 %v262_v3 }
  0x18   :  { %179 = vmatpush.bf16.msra.mxu1 %v261_v4 }
  0x1c   :  { %180 = vmatpush.bf16.msra.mxu1 %v260_v5 }
  0x20   :  { %181 = vmatpush.bf16.msra.mxu1 %v259_v6 }
  0x24   :  { %182 = vmatpush.bf16.msra.mxu1 %v258_v7 }
  0x28   :  { %183 = vmatpush.bf16.msra.mxu1 %v257_v8 }
  0x2c   :  { %184 = vmatpush.bf16.msra.mxu1 %v256_v9 }
  0x8f   :  { %v101_v10 = vpop.f32.mrf.mxu0 }
  0x90   :  { %v102_v12 = vadd.f32 %v272_v11, %v101_v10 }
  0x92   :  { %v106_v15 = vmax.f32 %v102_v12, 0.0 }
  0x97   :  { %v103_v13 = vpop.f32.mrf.mxu0 }
  0x98   :  { %v104_v14 = vadd.f32 %v272_v11, %v103_v13 }
  0x9a   :  { %v107_v16 = vmax.f32 %v104_v14, 0.0 }
  0x9c   :  { %v108_v17 = vpack.c.bf16 %v107_v16, %v106_v15 }
  0x9e   :  { %185 = vmatmul.bf16.vlgmr.msra.gmra.mxu1 %v108_v17 }
 0x11b   :  { %v186_v19 = vpop.f32.mrf.mxu1 }
 0x11c   :  { %v187_v20 = vadd.f32 %v273_v18, %v186_v19 }
 0x11e   :  { %191 = vst [vmem:[#allocation8] sm:$0xff] %v187_v20 }
 0x123   :  { %v188_v21 = vpop.f32.mrf.mxu1 }
 0x124   :  { %v189_v22 = vadd.f32 %v273_v18, %v188_v21 }
 0x126   :  { %192 = vst [vmem:[#allocation8 + $0x8] sm:$0xff] %v189_v22 }
 0x127   :  { %205 = dma.vmem_to_hbm [thread:$0]  %s198_s12, 256, %s200_s2, [#allocation4], %s382_s15, %s382_s15, %s383_s16  }
 0x128   :  { %374 = dma.done.wait [#allocation4], 256  }
 0x129   :  { %375 = vsyncadd [#allocation4], 4294967040 }
 0x12a   :  { %210 = vsyncpa [#allocation3], 1 }
 0x12b   :  { %211 = vsyncpa [#allocation6], 1 }
 0x12c   :  { %212 = vsyncpa [#allocation4], 1 }

// kernel: tpu_custom_call.1
= control target key start
LH: loop header
LB: loop body
LE: loop exit
PB: predicated region body
PF: predicated region fallthrough
CT: control target
= control target key end

     0   :  { %10 = vsyncpa [#allocation3], 0  ;;  %s432_s0 = inlined_call_operand.hbm [shape: bf16[16,16], index: 0, kind: input, shape index: {}]   ;;  %s433_s1 = inlined_call_operand.hbm [shape: bf16[16,128], index: 1, kind: input, shape index: {}]   ;;  %s434_s2 = inlined_call_operand.vmem [shape: f32[1,128], index: 2, kind: input, shape index: {}]   ;;  %s435_s3 = inlined_call_operand.hbm [shape: bf16[128,128], index: 3, kind: input, shape index: {}]   ;;  %s436_s4 = inlined_call_operand.vmem [shape: f32[1,128], index: 4, kind: input, shape index: {}]   ;;  %s437_s5 = inlined_call_operand.hbm [shape: f32[16,128], index: 5, kind: output, shape index: {}]  }
   0x1   :  { %11 = vsyncpa [#allocation6], 0 }
   0x2   :  { %12 = vsyncpa [#allocation4], 0  ;;  %s30_s20 = sshll.u32 %s433_s1, 4  ;;  %s376_s21 = smov [#allocation5]   ;;  %s31_s20 = int_to_ptr.hbm [resolvable:$true] %s30_s20 }
   0x3   :  { %s32_s22 = sshll.u32 %s376_s21, 4  ;;  %s17_s25 = sshll.u32 %s432_s0, 4  ;;  %s33_s22 = int_to_ptr.vmem [resolvable:$true] %s32_s22  ;;  %s18_s25 = int_to_ptr.hbm [resolvable:$true] %s17_s25 }
   0x4   :  { %s377_s26 = smov 64   ;;  %s378_s27 = smov 4  }
   0x5   :  { %38 = dma.hbm_to_vmem [thread:$0]  %s31_s20, 128, %s33_s22, [#allocation6], %s377_s26, %s377_s26, %s378_s27  }
   0x6   :  { %s379_s28 = smov [#allocation2]   ;;  %s45_s7 = sshll.u32 %s435_s3, 4  ;;  %s46_s7 = int_to_ptr.hbm [resolvable:$true] %s45_s7 }
   0x7   :  { %s19_s29 = sshll.u32 %s379_s28, 4  ;;  %s380_s1 = smov [#allocation7]   ;;  %s20_s29 = int_to_ptr.vmem [resolvable:$true] %s19_s29 }
   0x8   :  { %25 = dma.hbm_to_vmem [thread:$0]  %s18_s25, 128, %s20_s29, [#allocation3], %s377_s26, %s377_s26, %s378_s27  }
   0x9   :  { %s47_s8 = sshll.u32 %s380_s1, 4  ;;  %s48_s8 = int_to_ptr.vmem [resolvable:$true] %s47_s8 }
   0xa   :  { %53 = dma.hbm_to_vmem [thread:$0]  %s46_s7, 1024, %s48_s8, [#allocation6], %s377_s26, %s377_s26, %s378_s27  }
   0xb   :  { %370 = dma.done.wait [#allocation3], 128  }
   0xc   :  { %371 = vsyncadd [#allocation3], 4294967168 }
   0xd   :  { %372 = dma.done.wait [#allocation6], 1152  }
   0xe   :  { %373 = vsyncadd [#allocation6], 4294966144  ;;  %v255_v0 = vld [vmem:[#allocation5] sm:$0xff]  ;;  %v254_v2 = vld [vmem:[#allocation2] sm:$0xff]  ;;  %vm88_vm0 = vcmask 130048   ;;  %s381_s11 = smov [#allocation8]  }
   0xf   :  { %v263_v1 = vld [vmem:[#allocation7 + $0x38] sm:$0xff]  ;;  %99 = vmatpush.bf16.msra.mxu0 %v255_v0  ;;  %v262_v3 = vld [vmem:[#allocation7 + $0x30] sm:$0xff]  ;;  %v261_v4 = vld [vmem:[#allocation7 + $0x28] sm:$0xff]  ;;  %s197_s12 = sshll.u32 %s381_s11, 4  ;;  %s382_s15 = smov 128   ;;  %s198_s12 = int_to_ptr.vmem [resolvable:$true] %s197_s12 }
  0x10   :  { %177 = vmatpush.bf16.msra.mxu1 %v263_v1  ;;  %v260_v5 = vld [vmem:[#allocation7 + $0x20] sm:$0xff]  ;;  %v259_v6 = vld [vmem:[#allocation7 + $0x18] sm:$0xff]  ;;  %v258_v7 = vld [vmem:[#allocation7 + $0x10] sm:$0xff]  ;;  %s383_s16 = smov 8  }
  0x11   :  { %v257_v8 = vld [vmem:[#allocation7 + $0x8] sm:$0xff]  ;;  %v256_v9 = vld [vmem:[#allocation7] sm:$0xff]  ;;  %v272_v11 = vld [vmem:[%s434_s2] ss:$0 sm:$0xff]  ;;  %s199_s2 = sshll.u32 %s437_s5, 4  ;;  %s200_s2 = int_to_ptr.hbm [resolvable:$true] %s199_s2 }
  0x12   :  { %221 = vmatmul.msk.bf16.vlgmr.msra.gmra.mxu0 %vm88_vm0, %v254_v2  ;;  %v273_v18 = vld [vmem:[%s436_s4] ss:$0 sm:$0xff] }
  0x14   :  { %178 = vmatpush.bf16.msra.mxu1 %v262_v3 }
  0x18   :  { %179 = vmatpush.bf16.msra.mxu1 %v261_v4 }
  0x1c   :  { %180 = vmatpush.bf16.msra.mxu1 %v260_v5 }
  0x20   :  { %181 = vmatpush.bf16.msra.mxu1 %v259_v6 }
  0x24   :  { %182 = vmatpush.bf16.msra.mxu1 %v258_v7 }
  0x28   :  { %183 = vmatpush.bf16.msra.mxu1 %v257_v8 }
  0x2c   :  { %184 = vmatpush.bf16.msra.mxu1 %v256_v9 }
  0x8f   :  { %v101_v10 = vpop.f32.mrf.mxu0 }
  0x90   :  { %v102_v12 = vadd.f32 %v272_v11, %v101_v10 }
  0x92   :  { %v106_v15 = vmax.f32 %v102_v12, 0.0 }
  0x97   :  { %v103_v13 = vpop.f32.mrf.mxu0 }
  0x98   :  { %v104_v14 = vadd.f32 %v272_v11, %v103_v13 }
  0x9a   :  { %v107_v16 = vmax.f32 %v104_v14, 0.0 }
  0x9c   :  { %v108_v17 = vpack.c.bf16 %v107_v16, %v106_v15 }
  0x9e   :  { %185 = vmatmul.bf16.vlgmr.msra.gmra.mxu1 %v108_v17 }
 0x11b   :  { %v186_v19 = vpop.f32.mrf.mxu1 }
 0x11c   :  { %v187_v20 = vadd.f32 %v273_v18, %v186_v19 }
 0x11e   :  { %191 = vst [vmem:[#allocation8] sm:$0xff] %v187_v20 }
 0x123   :  { %v188_v21 = vpop.f32.mrf.mxu1 }
 0x124   :  { %v189_v22 = vadd.f32 %v273_v18, %v188_v21 }
 0x126   :  { %192 = vst [vmem:[#allocation8 + $0x8] sm:$0xff] %v189_v22 }
 0x127   :  { %205 = dma.vmem_to_hbm [thread:$0]  %s198_s12, 256, %s200_s2, [#allocation4], %s382_s15, %s382_s15, %s383_s16  }
 0x128   :  { %374 = dma.done.wait [#allocation4], 256  }
 0x129   :  { %375 = vsyncadd [#allocation4], 4294967040 }
 0x12a   :  { %210 = vsyncpa [#allocation3], 1 }
 0x12b   :  { %211 = vsyncpa [#allocation6], 1 }
 0x12c   :  { %212 = vsyncpa [#allocation4], 1 }

</bundles_post_ra>
